<compile_context>
chip_gen: v7x
topology: tpu7x:2x2x1
jax: 0.10.0
libtpu: 0.0.40
codegen_flags: <defaults>
</compile_context>

<pallas_src>
import functools

import jax
import jax.numpy as jnp
from jax.experimental import pallas as pl
from jax.experimental.pallas import tpu as pltpu


def _lagmps_kernel(s_ref, pk_ref, out_ref, *, penalty_w, penalty_k):
    s = s_ref[...]                                           # (TB, D), D <= 8
    D = s.shape[1]

    # Layer 1 of every model in one MXU push: (TB, D) x (D, 128), lane-dense.
    z = jnp.dot(s, pk_ref[0:D, :], preferred_element_type=jnp.float32)
    h = jnp.tanh(z + pk_ref[8:9, :])                         # (TB, 128); padded lanes -> tanh(0)=0

    # Layer 2 of every model: VPU multiply + XLU lane reduce.
    # pk row 9 already carries w2/M; pk[11, 0] carries sum(b2)/M.
    P = (jnp.sum(h * pk_ref[9:10, :], axis=-1, keepdims=True)
         + pk_ref[11:12, 0:1])                               # (TB, 1)

    # Hamiltonian term: dot of s with the precomputed coefficient row.
    Hval = jnp.sum(s * pk_ref[10:11, 0:D], axis=-1, keepdims=True)   # (TB, 1)

    # Eps = H / N and `value` are side attributes of the module, not part of the
    # returned objective, so they are not emitted as outputs.
    # penalty_k is a Python int -> integer_pow (one vmul for k == 2).
    out_ref[...] = Hval + jnp.float32(penalty_w) * P ** penalty_k


def pack_params(w1, b1, w2, b2, *, N, C, bc):
    """Pack all constant operands into ONE lane-dense (16, 128) f32 array.

    Run once per (weights, N, C, bc) — NOT per objective evaluation.
      rows 0:D -> W1 of all models, model-major columns, zero-padded to 128 lanes
      row  8   -> b1 of all models (zero-padded)
      row  9   -> w2 of all models, pre-scaled by 1/M (zero-padded)
      row 10   -> H coefficient row (lane 0: -N*C[1]; lane 5: -C[0]*(N-1) or -C[0]*N)
      row 11   -> lane 0: sum(b2)/M
    """
    M, D, HID = w1.shape
    F = M * HID
    if D > 8 or F > 128:
        raise ValueError("packing assumes D <= 8 and M*HID <= 128")
    if D < 6:
        raise ValueError("module indexes s[0, 5]; need D >= 6")
    if bc == "open":
        c5 = -float(C[0]) * (N - 1)
    elif bc == "periodic":
        c5 = -float(C[0]) * N
    else:
        raise ValueError(f"unknown bc: {bc}")
    c0 = -float(N) * float(C[1])

    pk = jnp.zeros((16, 128), jnp.float32)
    pk = pk.at[0:D, 0:F].set(jnp.transpose(w1, (1, 0, 2)).reshape(D, F))
    pk = pk.at[8, 0:F].set(b1.reshape(F))
    pk = pk.at[9, 0:F].set(w2.reshape(F) / M)
    pk = pk.at[10, 0].set(c0)
    pk = pk.at[10, 5].set(c5)
    pk = pk.at[11, 0].set(jnp.sum(b2) / M)
    return pk


@functools.partial(jax.jit, static_argnames=("penalty",))
def lagmps_forward(s, packed, *, penalty):
    """Evaluate the LagMPS_multi objective for a batch of candidate s vectors.

    s      : (B, D) f32 — B == 1 reproduces the module's forward exactly.
    packed : (16, 128) f32 from pack_params (precomputed once).
    Returns (B, 1) f32.
    """
    B, D = s.shape
    penalty_w = float(penalty[0])
    penalty_k = penalty[1]
    # Keep the exponent an integer so P ** k lowers to integer_pow instead of
    # exp(k*log(P)) (slower EUP path and NaN whenever P < 0).
    if isinstance(penalty_k, float):
        if not penalty_k.is_integer():
            raise TypeError("penalty exponent must be an integer")
    penalty_k = int(penalty_k)

    kern = functools.partial(_lagmps_kernel,
                             penalty_w=penalty_w, penalty_k=penalty_k)
    out_shape = jax.ShapeDtypeStruct((B, 1), jnp.float32)

    if B % 8 == 0:
        # Batched path: tile the candidate axis; "parallel" lets v7x's two
        # TensorCores split the grid (no effect on v5e/v6e, 1 TC).
        TB = min(B, 128)
        while B % TB:
            TB -= 8
        return pl.pallas_call(
            kern,
            out_shape=out_shape,
            grid=(B // TB,),
            in_specs=[
                pl.BlockSpec((TB, D), lambda i: (i, 0)),      # s tile
                pl.BlockSpec((16, 128), lambda i: (0, 0)),    # packed consts, resident
            ],
            out_specs=pl.BlockSpec((TB, 1), lambda i: (i, 0)),
            compiler_params=pltpu.CompilerParams(
                dimension_semantics=("parallel",)),
        )(s, packed)

    # Single-candidate / odd-B path (the module's (1, D) parameter): one
    # invocation, whole arrays in VMEM (total footprint < 16 KiB on any TPU).
    return pl.pallas_call(
        kern,
        out_shape=out_shape,
        in_specs=[
            pl.BlockSpec(memory_space=pltpu.MemorySpace.VMEM),
            pl.BlockSpec(memory_space=pltpu.MemorySpace.VMEM),
        ],
        out_specs=pl.BlockSpec(memory_space=pltpu.MemorySpace.VMEM),
    )(s, packed)


def lagmps_reference(s, w1, b1, w2, b2, *, N, C, penalty, bc):
    """Pure-JAX reference mirroring the PyTorch forward, batched over rows of s."""
    h = jnp.tanh(jnp.einsum("bd,mdh->mbh", s, w1) + b1)       # (M, B, HID)
    p = jnp.einsum("mbh,mho->mbo", h, w2) + b2                # (M, B, 1)
    P = jnp.mean(p[:, :, 0], axis=0)                          # (B,)
    if bc == "open":
        H = -C[0] * (N - 1) * s[:, 5] - N * C[1] * s[:, 0]
    elif bc == "periodic":
        H = -C[0] * N * s[:, 5] - N * C[1] * s[:, 0]
    else:
        raise ValueError(bc)
    return H + penalty[0] * P ** penalty[1]                   # (B,)


if __name__ == "__main__":
    # Small, deterministic problem setup consistent with the module.
    D, HID, M = 8, 32, 3            # s feature dim, surrogate hidden dim, #models
    N = 8                           # spin chain length
    C = (1.0, 0.5)                  # Hamiltonian coefficients (forward argument)
    penalty = (10.0, 2)             # (weight, integer exponent)
    bc = "open"

    key = jax.random.PRNGKey(0)
    k_init, k_w1, k_b1, k_w2, k_b2, k_batch = jax.random.split(key, 6)

    init = jax.random.normal(k_init, (D,), jnp.float32)       # numpy `init` analogue
    s = init[None, :]                                         # unsqueeze(0) -> (1, D)

    # TODO(synk): the ensemble `model` is not defined in the module; synthesize
    # deterministic 2-layer MLP surrogates here.
    w1 = 0.1 * jax.random.normal(k_w1, (M, D, HID), jnp.float32)
    b1 = 0.1 * jax.random.normal(k_b1, (M, 1, HID), jnp.float32)
    w2 = 0.1 * jax.random.normal(k_w2, (M, HID, 1), jnp.float32)
    b2 = 0.1 * jax.random.normal(k_b2, (M, 1, 1), jnp.float32)

    # Pack constants ONCE (hoisted out of the per-call path).
    packed = jax.block_until_ready(pack_params(w1, b1, w2, b2, N=N, C=C, bc=bc))

    # --- single-candidate path (module semantics: s is (1, D)) ---------------
    out = jax.block_until_ready(lagmps_forward(s, packed, penalty=penalty))
    ref = lagmps_reference(s, w1, b1, w2, b2, N=N, C=C, penalty=penalty, bc=bc)
    assert out.shape == (1, 1)
    assert jnp.allclose(out[0, 0], ref[0], rtol=1e-4, atol=1e-4), (out, ref)

    # --- batched path (grid over candidates, parallel axis for v7x) ----------
    B = 256
    s_batch = init[None, :] + 0.05 * jax.random.normal(k_batch, (B, D), jnp.float32)
    out_b = jax.block_until_ready(lagmps_forward(s_batch, packed, penalty=penalty))
    ref_b = lagmps_reference(s_batch, w1, b1, w2, b2, N=N, C=C, penalty=penalty, bc=bc)
    assert out_b.shape == (B, 1)
    assert jnp.allclose(out_b[:, 0], ref_b, rtol=1e-4, atol=1e-4), (out_b[:5, 0], ref_b[:5])

    print("KERNEL_OK")
</pallas_src>

<mosaic_0001>
module attributes {stable_mosaic.version = 11 : i64} {
  func.func @_lagmps_kernel(%arg0: memref<1x8xf32, #tpu.memory_space<vmem>>, %arg1: memref<16x128xf32, #tpu.memory_space<vmem>>, %arg2: memref<1x1xf32, #tpu.memory_space<vmem>>) attributes {dimension_semantics = [], scalar_prefetch = 0 : i64, scratch_operands = 0 : i64, tpu.core_type = #tpu.core_type<tc>} {
    %c0 = arith.constant 0 : index
    %c0_0 = arith.constant 0 : index
    %0 = vector.load %arg0[%c0, %c0_0] : memref<1x8xf32, #tpu.memory_space<vmem>>, vector<1x8xf32>
    %c0_1 = arith.constant 0 : index
    %c0_2 = arith.constant 0 : index
    %1 = vector.load %arg1[%c0_1, %c0_2] : memref<16x128xf32, #tpu.memory_space<vmem>>, vector<8x128xf32>
    %cst = arith.constant dense<0.000000e+00> : vector<1x128xf32>
    %2 = tpu.matmul %0, %1, %cst {dimension_numbers = #tpu.dot_dimension_numbers<[1], [0], [0], [1], [0, 0, 1, 1], [], []>} : vector<1x8xf32>, vector<8x128xf32>, vector<1x128xf32> -> vector<1x128xf32>
    %c8 = arith.constant 8 : index
    %c0_3 = arith.constant 0 : index
    %3 = vector.load %arg1[%c8, %c0_3] : memref<16x128xf32, #tpu.memory_space<vmem>>, vector<1x128xf32>
    %4 = arith.addf %2, %3 : vector<1x128xf32>
    %5 = math.tanh %4 : vector<1x128xf32>
    %c9 = arith.constant 9 : index
    %c0_4 = arith.constant 0 : index
    %6 = vector.load %arg1[%c9, %c0_4] : memref<16x128xf32, #tpu.memory_space<vmem>>, vector<1x128xf32>
    %7 = arith.mulf %5, %6 : vector<1x128xf32>
    %cst_5 = arith.constant dense<0.000000e+00> : vector<1xf32>
    %8 = vector.multi_reduction <add>, %7, %cst_5 [1] : vector<1x128xf32> to vector<1xf32>
    %9 = vector.shape_cast %8 : vector<1xf32> to vector<1x1xf32>
    %c11 = arith.constant 11 : index
    %c0_6 = arith.constant 0 : index
    %10 = vector.load %arg1[%c11, %c0_6] : memref<16x128xf32, #tpu.memory_space<vmem>>, vector<1x1xf32>
    %11 = arith.addf %9, %10 : vector<1x1xf32>
    %c10 = arith.constant 10 : index
    %c0_7 = arith.constant 0 : index
    %12 = vector.load %arg1[%c10, %c0_7] : memref<16x128xf32, #tpu.memory_space<vmem>>, vector<1x8xf32>
    %13 = arith.mulf %0, %12 : vector<1x8xf32>
    %cst_8 = arith.constant dense<0.000000e+00> : vector<1xf32>
    %14 = vector.multi_reduction <add>, %13, %cst_8 [1] : vector<1x8xf32> to vector<1xf32>
    %15 = vector.shape_cast %14 : vector<1xf32> to vector<1x1xf32>
    %16 = arith.mulf %11, %11 : vector<1x1xf32>
    %cst_9 = arith.constant 1.000000e+01 : f32
    %17 = vector.broadcast %cst_9 : f32 to vector<1x1xf32>
    %18 = arith.mulf %17, %16 : vector<1x1xf32>
    %19 = arith.addf %15, %18 : vector<1x1xf32>
    %c0_10 = arith.constant 0 : index
    %c0_11 = arith.constant 0 : index
    %20 = vector.load %arg2[%c0_10, %c0_11] : memref<1x1xf32, #tpu.memory_space<vmem>>, vector<1x1xf32>
    tpu.vector_store %arg2[%c0_10, %c0_11], %19 {strides = array<i32>} : memref<1x1xf32, #tpu.memory_space<vmem>>, vector<1x1xf32>,
    return
  }
}

</mosaic_0001>

<bundles_post_ra>
// kernel: lagmps_forward.1
= control target key start
LH: loop header
LB: loop body
LE: loop exit
PB: predicated region body
PF: predicated region fallthrough
CT: control target
= control target key end

     0   :  { %7 = vsyncpa [#allocation3], 0  ;;  %s305_s0 = inlined_call_operand.hbm [shape: f32[1,8], index: 0, kind: input, shape index: {}]   ;;  %s306_s1 = inlined_call_operand.hbm [shape: f32[16,128], index: 1, kind: input, shape index: {}]   ;;  %s307_s2 = inlined_call_operand.hbm [shape: f32[1,1], index: 2, kind: output, shape index: {}]  }
   0x1   :  { %8 = vsyncpa [#allocation6], 0 }
   0x2   :  { %9 = vsyncpa [#allocation4], 0  ;;  %s240_s9 = smov [#allocation2]   ;;  %s241_s11 = smov [#allocation5]  }
   0x3   :  { %s16_s10 = sshll.u32 %s240_s9, 4  ;;  %s25_s12 = sshll.u32 %s241_s11, 4  ;;  %s17_s10 = int_to_ptr.vmem [resolvable:$true] %s16_s10  ;;  %s262_s12 = int_to_ptr.vmem [resolvable:$true] %s25_s12 }
   0x4   :  { %s168_s15 = scalar_lea.hbm %s305_s0, 16 }
   0x5   :  { %p169_p0 = scmp.ne.s32.totalorder %s305_s0, %s168_s15  ;;  %p172_p1 = scmp.lt.u32.totalorder %s168_s15, %s305_s0 }
   0x7   :  { %p174_p2 = pnand %p172_p1, %p169_p0 }
   0x9   :  { %177 = shalt.err (!%p174_p2)
}
   0xa   :  { %s178_s20 = scalar_lea.vmem %s17_s10, 16  ;;  %s182_s21 = scalar_lea.vmem %s17_s10, 32 }
   0xb   :  { %p179_p3 = scmp.ne.s32.totalorder %s17_s10, %s178_s20  ;;  %p183_p4 = scmp.lt.s32.totalorder %s17_s10, %s17_s10 }
   0xc   :  { %p184_p5 = scmp.lt.s32.totalorder %s182_s21, %s178_s20 }
   0xe   :  { %p185_p6 = por %p184_p5, %p183_p4 }
  0x10   :  { %p186_p7 = pnand %p185_p6, %p179_p3 }
  0x12   :  { %189 = shalt.err (!%p186_p7)
}
  0x13   :  { %19 = dma.hbm_to_vmem [thread:$0]  %s305_s0, 16, %s17_s10, [#allocation3]  }
  0x14   :  { %s190_s26 = scalar_lea.hbm %s306_s1, 256 }
  0x15   :  { %p191_p8 = scmp.ne.s32.totalorder %s306_s1, %s190_s26  ;;  %p194_p9 = scmp.lt.u32.totalorder %s190_s26, %s306_s1 }
  0x17   :  { %p196_p10 = pnand %p194_p9, %p191_p8 }
  0x19   :  { %199 = shalt.err (!%p196_p10)
}
  0x1a   :  { %s200_s3 = scalar_lea.vmem %s262_s12, 256  ;;  %p205_p12 = scmp.lt.s32.totalorder %s262_s12, %s262_s12 }
  0x1b   :  { %p201_p11 = scmp.ne.s32.totalorder %s262_s12, %s200_s3  ;;  %p206_p13 = scmp.lt.s32.totalorder %s200_s3, %s200_s3 }
  0x1d   :  { %p207_p0 = por %p206_p13, %p205_p12 }
  0x1f   :  { %p208_p1 = pnand %p207_p0, %p201_p11 }
  0x21   :  { %211 = shalt.err (!%p208_p1)
}
  0x22   :  { %s242_s0 = smov 128   ;;  %s243_s4 = smov 8  }
  0x23   :  { %31 = dma.hbm_to_vmem [thread:$0]  %s306_s1, 256, %s262_s12, [#allocation6], %s242_s0, %s242_s0, %s243_s4  }
  0x24   :  { %234 = dma.done.wait [#allocation3], 16  }
  0x25   :  { %235 = vsyncadd [#allocation3], 4294967280 }
  0x26   :  { %236 = dma.done.wait [#allocation6], 256  }
  0x27   :  { %237 = vsyncadd [#allocation6], 4294967040  ;;  %v244_v0 = vmov 0.0   ;;  %vm245_vm0 = vmmov 0   ;;  %vm41_vm1 = vcmask 64512   ;;  %v39_v1 = vld [vmem:[#allocation5] sm:$0xff] }
  0x28   :  { %154 = vmatprep.subr.mxu0 %v244_v0  ;;  %156 = vmatprep.mubr.msk.f32.mxu0 %vm245_vm0, %v244_v0  ;;  %v38_v2 = vld [vmem:[#allocation2] sm:$0x1]  ;;  %v40_v3 = vld [vmem:[#allocation5 + $0x8] sm:$0x1]  ;;  %v116_v7 = vld [vmem:[#allocation5 + $0x9] sm:$0x1] }
  0x29   :  { %155 = vmatpush3.msra.mxu0 %v39_v1  ;;  %v124_v8 = vld [vmem:[#allocation5 + $0xa] sm:$0x1]  ;;  %vm118_vm2 = vcmask 1040384   ;;  %vm126_vm3 = vcmask 57344   ;;  %v122_v14 = vld [vmem:[#allocation5 + $0xb] sm:$0x1] }
  0x2a   :  { %157 = vmatmul.mubr.msk.f32.vlgmr.msra.gmra.mrb[0].mxu0 %vm41_vm1, %v38_v2  ;;  %v125_v11 = vmul.f32 %v124_v8, %v38_v2  ;;  %s246_s1 = smov [#allocation7]   ;;  %vm133_vm4 = vcmask 0  }
  0x2b   :  { %s141_s7 = sshll.u32 %s246_s1, 4  ;;  %s142_s7 = int_to_ptr.vmem [resolvable:$true] %s141_s7 }
  0x2c   :  { %v127_v13 = vsel %vm126_vm3, %v125_v11, 0.0  ;;  %s212_s8 = scalar_lea.vmem %s142_s7, 16  ;;  %s216_s9 = scalar_lea.vmem %s142_s7, 32 }
  0x2d   :  { %p213_p2 = scmp.ne.s32.totalorder %s142_s7, %s212_s8  ;;  %p217_p3 = scmp.lt.s32.totalorder %s142_s7, %s142_s7 }
  0x2e   :  { %p218_p4 = scmp.lt.s32.totalorder %s216_s9, %s212_s8 }
  0x30   :  { %p219_p5 = por %p218_p4, %p217_p3 }
  0x32   :  { %p220_p6 = pnand %p219_p5, %p213_p2 }
  0xfd   :  { %v111_v4 = vpop.f32.mrb[0].mxu0 }
  0xfe   :  { %v112_v5 = vadd.f32 %v111_v4, %v40_v3  ;;  %v158_v6 = vpop.f32.mrb[1].mxu0 }
 0x100   :  { %166 = vtanh.f32 %v112_v5 }
 0x10a   :  { %v167_v9 = vpop.eup %166 }
 0x10b   :  { %v117_v10 = vmul.f32 %v167_v9, %v116_v7 }
 0x10d   :  { %v119_v12 = vsel %vm118_vm2, %v117_v10, 0.0 }
 0x10e   :  { %120 = vadd.xlane.f32.xlu0 %v119_v12 }
 0x112   :  { %128 = vadd.xlane.f32.xlu0 %v127_v13 }
 0x19b   :  { %v121_v15 = vpop.xlane.xlu0 %120 }
 0x19c   :  { %v123_v16 = vadd.f32 %v122_v14, %v121_v15 }
 0x19e   :  { %v130_v17 = vmul.f32 %v123_v16, %v123_v16 }
 0x19f   :  { %v129_v18 = vpop.xlane.xlu0 %128 }
 0x1a0   :  { %v131_v19 = vmul.f32 10.0, %v130_v17 }
 0x1a2   :  { %v132_v20 = vadd.f32 %v131_v19, %v129_v18 }
 0x1a4   :  { %134 = vst.msk [vmem:[#allocation7] sm:$0x1] %vm133_vm4, %v132_v20 }
 0x1a5   :  { %223 = shalt.err (!%p220_p6)
}
 0x1a6   :  { %s224_s12 = scalar_lea.hbm %s307_s2, 16 }
 0x1a7   :  { %p225_p7 = scmp.ne.s32.totalorder %s307_s2, %s224_s12  ;;  %p228_p8 = scmp.lt.u32.totalorder %s224_s12, %s307_s2 }
 0x1a9   :  { %p230_p9 = pnand %p228_p8, %p225_p7 }
 0x1ab   :  { %233 = shalt.err (!%p230_p9)
}
 0x1ac   :  { %144 = dma.vmem_to_hbm [thread:$0]  %s142_s7, 16, %s307_s2, [#allocation4]  }
 0x1ad   :  { %238 = dma.done.wait [#allocation4], 16  }
 0x1ae   :  { %239 = vsyncadd [#allocation4], 4294967280 }
 0x1af   :  { %148 = vsyncpa [#allocation3], 1 }
 0x1b0   :  { %149 = vsyncpa [#allocation6], 1 }
 0x1b1   :  { %150 = vsyncpa [#allocation4], 1 }

</bundles_post_ra>
